<compile_context>
chip_gen: v5e
topology: v5e:2x2
jax: 0.10.0
libtpu: 0.0.40
codegen_flags: <defaults>
</compile_context>

<pallas_src>
import functools

import jax
import jax.numpy as jnp
from jax.experimental import pallas as pl
from jax.experimental.pallas import tpu as pltpu

NUM_BLOCKS = 3
NEG_SLOPE = 0.1          # LeakyReLU(0.1)
LN_EPS = 1e-5            # PyTorch LayerNorm default eps


# ---------------------------------------------------------------------------
# Shared math helpers (used by both the kernel and its pure-JAX twin).
# ---------------------------------------------------------------------------

def _leaky_relu(x):
    # max(x, a*x) with a < 1 == LeakyReLU; 2 VALU ops/elem vs 3 for where().
    return jnp.maximum(x, NEG_SLOPE * x)


def _standardize_stats(x):
    """Independent lane reductions: mean and E[x^2]; var = E[x^2] - mean^2.
    The two XLU reductions have no data dependence so they pipeline."""
    m = jnp.mean(x, axis=-1, keepdims=True)
    m2 = jnp.mean(x * x, axis=-1, keepdims=True)
    inv_std = jax.lax.rsqrt(m2 - m * m + LN_EPS)
    return x - m, inv_std


def _norm_to_bf16(x, *, bf16_elementwise):
    """LayerNorm without affine (gamma/beta folded into the next Linear),
    producing the bf16 MXU operand.  On v6e/v7x the scale multiply is done in
    bf16 (packed VALU); on v5e (no bf16 VPU) it stays f32 and is cast after."""
    centered, inv_std = _standardize_stats(x)
    if bf16_elementwise:
        return centered.astype(jnp.bfloat16) * inv_std.astype(jnp.bfloat16)
    return (centered * inv_std).astype(jnp.bfloat16)


# ---------------------------------------------------------------------------
# Kernel
# ---------------------------------------------------------------------------

def simple_model_kernel(x_ref, w_in_ref, b_in_ref,
                        w1_ref, b1_ref, w2_ref, b2_ref,
                        w_out_ref, b_out_ref, o_ref,
                        *, lane_reduce_out, bf16_elementwise):
    """One batch tile end-to-end: matmuls in bf16 with f32 MXU accumulation,
    norm/activation/bias math in f32 (bf16 scale-mul on v6e/v7x)."""
    bf16 = jnp.bfloat16

    # Input layer (K = num_features <= 128 -> single MXU pass).
    h = jnp.dot(x_ref[...].astype(bf16), w_in_ref[...],
                preferred_element_type=jnp.float32) + b_in_ref[...]

    # Residual blocks, statically unrolled.  gamma/beta already folded into
    # (w1, b1) / (w2, b2), so the norm is just (x - mean) * rsqrt(var + eps).
    for blk in range(NUM_BLOCKS):
        residual = h
        out = jnp.dot(_norm_to_bf16(h, bf16_elementwise=bf16_elementwise),
                      w1_ref[blk], preferred_element_type=jnp.float32) + b1_ref[blk]
        out = _leaky_relu(out)
        # nn.Dropout(p) is identity in eval/inference mode.
        out = jnp.dot(_norm_to_bf16(out, bf16_elementwise=bf16_elementwise),
                      w2_ref[blk], preferred_element_type=jnp.float32) + b2_ref[blk]
        h = _leaky_relu(out + residual)

    if lane_reduce_out:
        # output_dim == 1: a 1-wide MXU matmul wastes an entire MXU push/drain,
        # so do the 128 -> 1 projection on the VPU + XLU lane reduction instead
        # (w_out_ref holds the single output column as a (1, H) f32 row).
        o = jnp.sum(h * w_out_ref[...], axis=-1, keepdims=True) + b_out_ref[...]
        o_ref[...] = o.astype(o_ref.dtype)
    else:
        o_ref[...] = (jnp.dot(h.astype(bf16), w_out_ref[...],
                              preferred_element_type=jnp.float32)
                      + b_out_ref[...]).astype(o_ref.dtype)


# ---------------------------------------------------------------------------
# Parameter folding (done once at parameter-load time, not per forward call)
# ---------------------------------------------------------------------------

def fold_params(params, *, lane_reduce_out):
    """Fold LayerNorm gamma/beta into the following Linear and cast matmul
    weights to bf16 (accumulation stays f32 inside the kernel).

    LN(x) @ W + b == x_hat @ (diag(gamma) @ W) + (beta @ W + b)
    """
    f32, bf16 = jnp.float32, jnp.bfloat16
    w1, b1, w2, b2 = params["w1"], params["b1"], params["w2"], params["b2"]
    g1, be1, g2, be2 = params["g1"], params["be1"], params["g2"], params["be2"]

    w1f = (w1 * jnp.swapaxes(g1, -1, -2)).astype(bf16)
    b1f = (jnp.einsum("nij,njk->nik", be1, w1) + b1).astype(f32)
    w2f = (w2 * jnp.swapaxes(g2, -1, -2)).astype(bf16)
    b2f = (jnp.einsum("nij,njk->nik", be2, w2) + b2).astype(f32)

    folded = dict(
        w_in=params["w_in"].astype(bf16),
        b_in=params["b_in"].astype(f32),
        w1=w1f, b1=b1f, w2=w2f, b2=b2f,
    )
    if lane_reduce_out:
        folded["w_out"] = params["w_out"].T.astype(f32)   # (1, H) row, f32 (VPU path)
        folded["b_out"] = params["b_out"].astype(f32)     # (1, 1)
    else:
        folded["w_out"] = params["w_out"].astype(bf16)
        folded["b_out"] = params["b_out"].astype(f32)
    return folded


# ---------------------------------------------------------------------------
# Wrapper
# ---------------------------------------------------------------------------

def _device_kind():
    try:
        return jax.devices()[0].device_kind.lower()
    except Exception:  # pragma: no cover - detection is best-effort only
        return ""


def _is_v5e(kind):
    return ("v5" in kind) and (("lite" in kind) or ("v5e" in kind))


def _supports_bf16_vpu(kind):
    # v6e/v7x VALUs support bf16; v5e does not -> keep elementwise math f32 there.
    return ("v6" in kind) or ("v7" in kind)


def _pick_batch_tile(batch, kind):
    # One big tile amortizes the ~0.35us/grid-step pipeline overhead; batch_tile
    # only needs to be a multiple of 8 (f32 sublane tiling) -- the MXU streams M.
    # v5e is MXU-matched (4x128^2) and has no bf16 VPU, so cap tiles at 1024;
    # v6e/v7x go to 2048 (x tile 256 KB, H=128 intermediates ~1 MB each).
    cap = 1024 if _is_v5e(kind) else 2048
    if batch <= cap:
        return batch          # single grid step, block == full array (always legal)
    # TODO(synk): on v7x keep the resulting grid-step count even so neither
    # TensorCore idles on the last step when core_parallel is enabled.
    return cap


def simple_model_forward(x, folded, *, batch_tile=None, core_parallel=False):
    """Forward pass on pre-folded params (see fold_params). Safe to jax.jit."""
    B, F = x.shape
    H = folded["w_in"].shape[1]

    # fold_params encodes the output head: f32 (1, H) row => VPU lane-reduce
    # path (output_dim == 1); bf16 (H, O) => MXU matmul path.
    lane_reduce_out = (folded["w_out"].dtype == jnp.float32
                       and folded["w_out"].shape[0] == 1)
    O = 1 if lane_reduce_out else folded["w_out"].shape[1]

    kind = _device_kind()
    bf16_elementwise = _supports_bf16_vpu(kind)

    if batch_tile is None:
        batch_tile = _pick_batch_tile(B, kind)
    batch_tile = min(batch_tile, B)

    # Pad ragged batches with zero rows (harmless: there is no cross-row
    # reduction, and (0-0)*rsqrt(0+eps) == 0 so no NaNs from LayerNorm).
    Bp = -(-B // batch_tile) * batch_tile
    x_p = jnp.pad(x, ((0, Bp - B), (0, 0))) if Bp != B else x
    grid = (Bp // batch_tile,)

    ordered = [folded["w_in"], folded["b_in"], folded["w1"], folded["b1"],
               folded["w2"], folded["b2"], folded["w_out"], folded["b_out"]]

    def resident_spec(shape):
        nd = len(shape)
        # Block index never changes across the grid -> weights stay resident.
        # (At H=128 double-buffering them costs ~200 KB; if H is ever scaled
        #  large, add pipeline_mode=pl.Buffered(1) here / move the block axis
        #  of w1/w2 into the grid to fit v7x's 64 MiB VMEM.)
        return pl.BlockSpec(shape, lambda i, _nd=nd: (0,) * _nd)

    in_specs = [pl.BlockSpec((batch_tile, F), lambda i: (i, 0))]
    in_specs += [resident_spec(p.shape) for p in ordered]
    out_specs = pl.BlockSpec((batch_tile, O), lambda i: (i, 0))

    # VMEM budget: x/out tiles double-buffered + resident (double-buffered)
    # weights + the (batch_tile, H) f32 in-kernel temporaries (h, residual,
    # out, centered, x*x, matmul accumulator ~ 6 live).
    param_bytes = sum(int(p.nbytes) for p in ordered)
    live_f32_temps = 6
    act_bytes = live_f32_temps * batch_tile * H * 4
    io_bytes = 2 * batch_tile * (F + O) * 4
    weight_bytes = 2 * param_bytes
    vmem_limit = int(min(56 * 2**20,                      # v7x headroom cap
                         max(16 * 2**20,
                             2 * (act_bytes + io_bytes + weight_bytes))))

    cost = pl.CostEstimate(
        flops=2 * Bp * (F * H + NUM_BLOCKS * 2 * H * H + H * O),
        transcendentals=Bp * NUM_BLOCKS * 2,              # rsqrt per LN per row
        bytes_accessed=int(x_p.nbytes) + param_bytes + Bp * O * 4,
    )

    # On v7x pass core_parallel=True so the batch axis is split across the
    # chip's 2 TensorCores; plain "parallel" is the safe default elsewhere.
    batch_sem = pltpu.CORE_PARALLEL if core_parallel else "parallel"

    out = pl.pallas_call(
        functools.partial(simple_model_kernel,
                          lane_reduce_out=lane_reduce_out,
                          bf16_elementwise=bf16_elementwise),
        out_shape=jax.ShapeDtypeStruct((Bp, O), jnp.float32),
        grid=grid,
        in_specs=in_specs,
        out_specs=out_specs,
        compiler_params=pltpu.CompilerParams(
            dimension_semantics=(batch_sem,),
            vmem_limit_bytes=vmem_limit),
        cost_estimate=cost,
    )(x_p, *ordered)

    return out[:B] if Bp != B else out


# ---------------------------------------------------------------------------
# Init + references
# ---------------------------------------------------------------------------

def init_params(key, num_features, hidden_dim, output_dim):
    """PyTorch-style uniform(-1/sqrt(fan_in)) Linear init.  LayerNorm affine
    params are randomized (instead of ones/zeros) so the gamma/beta-folding
    path is actually exercised by the correctness check."""
    ks = jax.random.split(key, 4 + 2 * NUM_BLOCKS)

    def lin(k, fan_in, fan_out):
        bound = 1.0 / jnp.sqrt(fan_in)
        kw, kb = jax.random.split(k)
        w = jax.random.uniform(kw, (fan_in, fan_out), jnp.float32, -bound, bound)
        b = jax.random.uniform(kb, (1, fan_out), jnp.float32, -bound, bound)
        return w, b

    w_in, b_in = lin(ks[0], num_features, hidden_dim)
    w_out, b_out = lin(ks[1], hidden_dim, output_dim)

    w1, b1, w2, b2 = [], [], [], []
    for blk in range(NUM_BLOCKS):
        wa, ba = lin(ks[2 + 2 * blk], hidden_dim, hidden_dim)
        wb, bb = lin(ks[3 + 2 * blk], hidden_dim, hidden_dim)
        w1.append(wa); b1.append(ba); w2.append(wb); b2.append(bb)

    kg1, kg2 = jax.random.split(ks[-1])
    g_shape = (NUM_BLOCKS, 1, hidden_dim)
    return dict(
        w_in=w_in, b_in=b_in,
        w1=jnp.stack(w1), b1=jnp.stack(b1),
        g1=1.0 + 0.1 * jax.random.normal(kg1, g_shape, jnp.float32),
        be1=0.1 * jax.random.normal(jax.random.fold_in(kg1, 1), g_shape, jnp.float32),
        w2=jnp.stack(w2), b2=jnp.stack(b2),
        g2=1.0 + 0.1 * jax.random.normal(kg2, g_shape, jnp.float32),
        be2=0.1 * jax.random.normal(jax.random.fold_in(kg2, 1), g_shape, jnp.float32),
        w_out=w_out, b_out=b_out,
    )


def _standardize_ref(x):
    """Classic two-pass LayerNorm core (reference only)."""
    m = jnp.mean(x, axis=-1, keepdims=True)
    c = x - m
    v = jnp.mean(c * c, axis=-1, keepdims=True)
    return c * jax.lax.rsqrt(v + LN_EPS)


def reference_forward(x, p):
    """Pure-f32 JAX reference matching the PyTorch module semantics."""
    h = x @ p["w_in"] + p["b_in"]
    for blk in range(NUM_BLOCKS):
        residual = h
        n1 = _standardize_ref(h) * p["g1"][blk] + p["be1"][blk]
        out = _leaky_relu(n1 @ p["w1"][blk] + p["b1"][blk])
        n2 = _standardize_ref(out) * p["g2"][blk] + p["be2"][blk]
        out = n2 @ p["w2"][blk] + p["b2"][blk]
        h = _leaky_relu(out + residual)
    return h @ p["w_out"] + p["b_out"]


def reference_forward_folded(x, fp, *, bf16_elementwise):
    """Pure-JAX twin of the kernel's exact numerics (folded LN, bf16 matmuls,
    E[x^2]-mean^2 variance, bf16 scale-mul on v6e/v7x)."""
    bf16 = jnp.bfloat16

    def mm(a_bf16, w):
        return jnp.dot(a_bf16, w, preferred_element_type=jnp.float32)

    h = mm(x.astype(bf16), fp["w_in"]) + fp["b_in"]
    for blk in range(NUM_BLOCKS):
        residual = h
        out = _leaky_relu(mm(_norm_to_bf16(h, bf16_elementwise=bf16_elementwise),
                             fp["w1"][blk]) + fp["b1"][blk])
        out = mm(_norm_to_bf16(out, bf16_elementwise=bf16_elementwise),
                 fp["w2"][blk]) + fp["b2"][blk]
        h = _leaky_relu(out + residual)
    if fp["w_out"].dtype == jnp.float32 and fp["w_out"].shape[0] == 1:
        return jnp.sum(h * fp["w_out"], axis=-1, keepdims=True) + fp["b_out"]
    return mm(h.astype(bf16), fp["w_out"]) + fp["b_out"]


# ---------------------------------------------------------------------------
# Main
# ---------------------------------------------------------------------------

if __name__ == "__main__":
    NUM_FEATURES = 32
    HIDDEN_DIM = 128
    OUTPUT_DIM = 1
    BATCH = 16

    key = jax.random.PRNGKey(0)
    k_x, k_p = jax.random.split(key)
    x = jax.random.normal(k_x, (BATCH, NUM_FEATURES), jnp.float32)
    params = init_params(k_p, NUM_FEATURES, HIDDEN_DIM, OUTPUT_DIM)

    # gamma/beta folding + bf16 weight casts are done once at load time.
    folded = fold_params(params, lane_reduce_out=(OUTPUT_DIM == 1))

    # Whole forward (pad -> pallas_call -> slice) under one jit.
    fwd = jax.jit(simple_model_forward,
                  static_argnames=("batch_tile", "core_parallel"))
    out = jax.block_until_ready(fwd(x, folded))
    assert out.shape == (BATCH, OUTPUT_DIM)

    # Tight check against a JAX twin of the kernel's exact numerics.
    bf16_ew = _supports_bf16_vpu(_device_kind())
    ref_exact = reference_forward_folded(x, folded, bf16_elementwise=bf16_ew)
    assert jnp.allclose(out, ref_exact, atol=2e-3, rtol=2e-3), \
        "mismatch vs folded/bf16 reference"

    # Loose check against the f32 PyTorch-semantics forward (bf16 MXU operands
    # introduce <~1% relative error).
    ref_f32 = reference_forward(x, params)
    assert jnp.allclose(out, ref_f32, atol=5e-2, rtol=5e-2), \
        "mismatch vs f32 reference"

    print("KERNEL_OK")
</pallas_src>

<mosaic_0001>
module attributes {stable_mosaic.version = 11 : i64} {
  func.func @simple_model_kernel(%arg0: i32, %arg1: memref<16x32xf32, #tpu.memory_space<vmem>>, %arg2: memref<32x128xbf16, #tpu.memory_space<vmem>>, %arg3: memref<1x128xf32, #tpu.memory_space<vmem>>, %arg4: memref<3x128x128xbf16, #tpu.memory_space<vmem>>, %arg5: memref<3x1x128xf32, #tpu.memory_space<vmem>>, %arg6: memref<3x128x128xbf16, #tpu.memory_space<vmem>>, %arg7: memref<3x1x128xf32, #tpu.memory_space<vmem>>, %arg8: memref<1x128xf32, #tpu.memory_space<vmem>>, %arg9: memref<1x1xf32, #tpu.memory_space<vmem>>, %arg10: memref<16x1xf32, #tpu.memory_space<vmem>>) attributes {dimension_semantics = [#tpu.dimension_semantics<parallel>], iteration_bounds = array<i64: 1>, scalar_prefetch = 0 : i64, scratch_operands = 0 : i64, tpu.core_type = #tpu.core_type<tc>, window_params = [{transform_indices = @transform_0, window_bounds = array<i64: 16, 32>}, {pipeline_mode = #tpu.pipeline_mode<synchronous>, transform_indices = @transform_1, window_bounds = array<i64: 32, 128>}, {pipeline_mode = #tpu.pipeline_mode<synchronous>, transform_indices = @transform_2, window_bounds = array<i64: 1, 128>}, {pipeline_mode = #tpu.pipeline_mode<synchronous>, transform_indices = @transform_3, window_bounds = array<i64: 3, 128, 128>}, {pipeline_mode = #tpu.pipeline_mode<synchronous>, transform_indices = @transform_4, window_bounds = array<i64: 3, 1, 128>}, {pipeline_mode = #tpu.pipeline_mode<synchronous>, transform_indices = @transform_5, window_bounds = array<i64: 3, 128, 128>}, {pipeline_mode = #tpu.pipeline_mode<synchronous>, transform_indices = @transform_6, window_bounds = array<i64: 3, 1, 128>}, {pipeline_mode = #tpu.pipeline_mode<synchronous>, transform_indices = @transform_7, window_bounds = array<i64: 1, 128>}, {pipeline_mode = #tpu.pipeline_mode<synchronous>, transform_indices = @transform_8, window_bounds = array<i64: 1, 1>}, {transform_indices = @transform_9, window_bounds = array<i64: 16, 1>}]} {
    %c0 = arith.constant 0 : index
    %c0_0 = arith.constant 0 : index
    %0 = vector.load %arg1[%c0, %c0_0] : memref<16x32xf32, #tpu.memory_space<vmem>>, vector<16x32xf32>
    %1 = arith.truncf %0 : vector<16x32xf32> to vector<16x32xbf16>
    %c0_1 = arith.constant 0 : index
    %c0_2 = arith.constant 0 : index
    %2 = vector.load %arg2[%c0_1, %c0_2] : memref<32x128xbf16, #tpu.memory_space<vmem>>, vector<32x128xbf16>
    %cst = arith.constant dense<0.000000e+00> : vector<16x128xf32>
    %3 = tpu.matmul %1, %2, %cst {dimension_numbers = #tpu.dot_dimension_numbers<[1], [0], [0], [1], [0, 0, 1, 1], [], []>} : vector<16x32xbf16>, vector<32x128xbf16>, vector<16x128xf32> -> vector<16x128xf32>
    %c0_3 = arith.constant 0 : index
    %c0_4 = arith.constant 0 : index
    %4 = vector.load %arg3[%c0_3, %c0_4] : memref<1x128xf32, #tpu.memory_space<vmem>>, vector<1x128xf32>
    %5 = vector.broadcast %4 : vector<1x128xf32> to vector<16x128xf32>
    %6 = arith.addf %3, %5 : vector<16x128xf32>
    %cst_5 = arith.constant dense<0.000000e+00> : vector<16xf32>
    %7 = vector.multi_reduction <add>, %6, %cst_5 [1] : vector<16x128xf32> to vector<16xf32>
    %8 = vector.shape_cast %7 : vector<16xf32> to vector<16x1xf32>
    %cst_6 = arith.constant 1.280000e+02 : f32
    %9 = vector.broadcast %cst_6 : f32 to vector<16x1xf32>
    %10 = arith.divf %8, %9 : vector<16x1xf32>
    %11 = arith.mulf %6, %6 : vector<16x128xf32>
    %cst_7 = arith.constant dense<0.000000e+00> : vector<16xf32>
    %12 = vector.multi_reduction <add>, %11, %cst_7 [1] : vector<16x128xf32> to vector<16xf32>
    %13 = vector.shape_cast %12 : vector<16xf32> to vector<16x1xf32>
    %cst_8 = arith.constant 1.280000e+02 : f32
    %14 = vector.broadcast %cst_8 : f32 to vector<16x1xf32>
    %15 = arith.divf %13, %14 : vector<16x1xf32>
    %16 = arith.mulf %10, %10 : vector<16x1xf32>
    %17 = arith.subf %15, %16 : vector<16x1xf32>
    %cst_9 = arith.constant 9.99999974E-6 : f32
    %18 = vector.broadcast %cst_9 : f32 to vector<16x1xf32>
    %19 = arith.addf %17, %18 : vector<16x1xf32>
    %20 = math.rsqrt %19 : vector<16x1xf32>
    %21 = vector.broadcast %10 : vector<16x1xf32> to vector<16x128xf32>
    %22 = arith.subf %6, %21 : vector<16x128xf32>
    %23 = vector.broadcast %20 : vector<16x1xf32> to vector<16x128xf32>
    %24 = arith.mulf %22, %23 : vector<16x128xf32>
    %25 = arith.truncf %24 : vector<16x128xf32> to vector<16x128xbf16>
    %c0_10 = arith.constant 0 : index
    %c0_11 = arith.constant 0 : index
    %c0_12 = arith.constant 0 : index
    %26 = vector.load %arg4[%c0_10, %c0_11, %c0_12] : memref<3x128x128xbf16, #tpu.memory_space<vmem>>, vector<1x128x128xbf16>
    %27 = vector.shape_cast %26 : vector<1x128x128xbf16> to vector<128x128xbf16>
    %cst_13 = arith.constant dense<0.000000e+00> : vector<16x128xf32>
    %28 = tpu.matmul %25, %27, %cst_13 {dimension_numbers = #tpu.dot_dimension_numbers<[1], [0], [0], [1], [0, 0, 1, 1], [], []>} : vector<16x128xbf16>, vector<128x128xbf16>, vector<16x128xf32> -> vector<16x128xf32>
    %c0_14 = arith.constant 0 : index
    %c0_15 = arith.constant 0 : index
    %c0_16 = arith.constant 0 : index
    %29 = vector.load %arg5[%c0_14, %c0_15, %c0_16] : memref<3x1x128xf32, #tpu.memory_space<vmem>>, vector<1x1x128xf32>
    %30 = vector.shape_cast %29 : vector<1x1x128xf32> to vector<1x128xf32>
    %31 = vector.broadcast %30 : vector<1x128xf32> to vector<16x128xf32>
    %32 = arith.addf %28, %31 : vector<16x128xf32>
    %cst_17 = arith.constant 1.000000e-01 : f32
    %33 = vector.broadcast %cst_17 : f32 to vector<16x128xf32>
    %34 = arith.mulf %33, %32 : vector<16x128xf32>
    %35 = arith.maximumf %32, %34 : vector<16x128xf32>
    %cst_18 = arith.constant dense<0.000000e+00> : vector<16xf32>
    %36 = vector.multi_reduction <add>, %35, %cst_18 [1] : vector<16x128xf32> to vector<16xf32>
    %37 = vector.shape_cast %36 : vector<16xf32> to vector<16x1xf32>
    %cst_19 = arith.constant 1.280000e+02 : f32
    %38 = vector.broadcast %cst_19 : f32 to vector<16x1xf32>
    %39 = arith.divf %37, %38 : vector<16x1xf32>
    %40 = arith.mulf %35, %35 : vector<16x128xf32>
    %cst_20 = arith.constant dense<0.000000e+00> : vector<16xf32>
    %41 = vector.multi_reduction <add>, %40, %cst_20 [1] : vector<16x128xf32> to vector<16xf32>
    %42 = vector.shape_cast %41 : vector<16xf32> to vector<16x1xf32>
    %cst_21 = arith.constant 1.280000e+02 : f32
    %43 = vector.broadcast %cst_21 : f32 to vector<16x1xf32>
    %44 = arith.divf %42, %43 : vector<16x1xf32>
    %45 = arith.mulf %39, %39 : vector<16x1xf32>
    %46 = arith.subf %44, %45 : vector<16x1xf32>
    %cst_22 = arith.constant 9.99999974E-6 : f32
    %47 = vector.broadcast %cst_22 : f32 to vector<16x1xf32>
    %48 = arith.addf %46, %47 : vector<16x1xf32>
    %49 = math.rsqrt %48 : vector<16x1xf32>
    %50 = vector.broadcast %39 : vector<16x1xf32> to vector<16x128xf32>
    %51 = arith.subf %35, %50 : vector<16x128xf32>
    %52 = vector.broadcast %49 : vector<16x1xf32> to vector<16x128xf32>
    %53 = arith.mulf %51, %52 : vector<16x128xf32>
    %54 = arith.truncf %53 : vector<16x128xf32> to vector<16x128xbf16>
    %c0_23 = arith.constant 0 : index
    %c0_24 = arith.constant 0 : index
    %c0_25 = arith.constant 0 : index
    %55 = vector.load %arg6[%c0_23, %c0_24, %c0_25] : memref<3x128x128xbf16, #tpu.memory_space<vmem>>, vector<1x128x128xbf16>
    %56 = vector.shape_cast %55 : vector<1x128x128xbf16> to vector<128x128xbf16>
    %cst_26 = arith.constant dense<0.000000e+00> : vector<16x128xf32>
    %57 = tpu.matmul %54, %56, %cst_26 {dimension_numbers = #tpu.dot_dimension_numbers<[1], [0], [0], [1], [0, 0, 1, 1], [], []>} : vector<16x128xbf16>, vector<128x128xbf16>, vector<16x128xf32> -> vector<16x128xf32>
    %c0_27 = arith.constant 0 : index
    %c0_28 = arith.constant 0 : index
    %c0_29 = arith.constant 0 : index
    %58 = vector.load %arg7[%c0_27, %c0_28, %c0_29] : memref<3x1x128xf32, #tpu.memory_space<vmem>>, vector<1x1x128xf32>
    %59 = vector.shape_cast %58 : vector<1x1x128xf32> to vector<1x128xf32>
    %60 = vector.broadcast %59 : vector<1x128xf32> to vector<16x128xf32>
    %61 = arith.addf %57, %60 : vector<16x128xf32>
    %62 = arith.addf %61, %6 : vector<16x128xf32>
    %cst_30 = arith.constant 1.000000e-01 : f32
    %63 = vector.broadcast %cst_30 : f32 to vector<16x128xf32>
    %64 = arith.mulf %63, %62 : vector<16x128xf32>
    %65 = arith.maximumf %62, %64 : vector<16x128xf32>
    %cst_31 = arith.constant dense<0.000000e+00> : vector<16xf32>
    %66 = vector.multi_reduction <add>, %65, %cst_31 [1] : vector<16x128xf32> to vector<16xf32>
    %67 = vector.shape_cast %66 : vector<16xf32> to vector<16x1xf32>
    %cst_32 = arith.constant 1.280000e+02 : f32
    %68 = vector.broadcast %cst_32 : f32 to vector<16x1xf32>
    %69 = arith.divf %67, %68 : vector<16x1xf32>
    %70 = arith.mulf %65, %65 : vector<16x128xf32>
    %cst_33 = arith.constant dense<0.000000e+00> : vector<16xf32>
    %71 = vector.multi_reduction <add>, %70, %cst_33 [1] : vector<16x128xf32> to vector<16xf32>
    %72 = vector.shape_cast %71 : vector<16xf32> to vector<16x1xf32>
    %cst_34 = arith.constant 1.280000e+02 : f32
    %73 = vector.broadcast %cst_34 : f32 to vector<16x1xf32>
    %74 = arith.divf %72, %73 : vector<16x1xf32>
    %75 = arith.mulf %69, %69 : vector<16x1xf32>
    %76 = arith.subf %74, %75 : vector<16x1xf32>
    %cst_35 = arith.constant 9.99999974E-6 : f32
    %77 = vector.broadcast %cst_35 : f32 to vector<16x1xf32>
    %78 = arith.addf %76, %77 : vector<16x1xf32>
    %79 = math.rsqrt %78 : vector<16x1xf32>
    %80 = vector.broadcast %69 : vector<16x1xf32> to vector<16x128xf32>
    %81 = arith.subf %65, %80 : vector<16x128xf32>
    %82 = vector.broadcast %79 : vector<16x1xf32> to vector<16x128xf32>
    %83 = arith.mulf %81, %82 : vector<16x128xf32>
    %84 = arith.truncf %83 : vector<16x128xf32> to vector<16x128xbf16>
    %c1 = arith.constant 1 : index
    %c0_36 = arith.constant 0 : index
    %c0_37 = arith.constant 0 : index
    %85 = vector.load %arg4[%c1, %c0_36, %c0_37] : memref<3x128x128xbf16, #tpu.memory_space<vmem>>, vector<1x128x128xbf16>
    %86 = vector.shape_cast %85 : vector<1x128x128xbf16> to vector<128x128xbf16>
    %cst_38 = arith.constant dense<0.000000e+00> : vector<16x128xf32>
    %87 = tpu.matmul %84, %86, %cst_38 {dimension_numbers = #tpu.dot_dimension_numbers<[1], [0], [0], [1], [0, 0, 1, 1], [], []>} : vector<16x128xbf16>, vector<128x128xbf16>, vector<16x128xf32> -> vector<16x128xf32>
    %c1_39 = arith.constant 1 : index
    %c0_40 = arith.constant 0 : index
    %c0_41 = arith.constant 0 : index
    %88 = vector.load %arg5[%c1_39, %c0_40, %c0_41] : memref<3x1x128xf32, #tpu.memory_space<vmem>>, vector<1x1x128xf32>
    %89 = vector.shape_cast %88 : vector<1x1x128xf32> to vector<1x128xf32>
    %90 = vector.broadcast %89 : vector<1x128xf32> to vector<16x128xf32>
    %91 = arith.addf %87, %90 : vector<16x128xf32>
    %cst_42 = arith.constant 1.000000e-01 : f32
    %92 = vector.broadcast %cst_42 : f32 to vector<16x128xf32>
    %93 = arith.mulf %92, %91 : vector<16x128xf32>
    %94 = arith.maximumf %91, %93 : vector<16x128xf32>
    %cst_43 = arith.constant dense<0.000000e+00> : vector<16xf32>
    %95 = vector.multi_reduction <add>, %94, %cst_43 [1] : vector<16x128xf32> to vector<16xf32>
    %96 = vector.shape_cast %95 : vector<16xf32> to vector<16x1xf32>
    %cst_44 = arith.constant 1.280000e+02 : f32
    %97 = vector.broadcast %cst_44 : f32 to vector<16x1xf32>
    %98 = arith.divf %96, %97 : vector<16x1xf32>
    %99 = arith.mulf %94, %94 : vector<16x128xf32>
    %cst_45 = arith.constant dense<0.000000e+00> : vector<16xf32>
    %100 = vector.multi_reduction <add>, %99, %cst_45 [1] : vector<16x128xf32> to vector<16xf32>
    %101 = vector.shape_cast %100 : vector<16xf32> to vector<16x1xf32>
    %cst_46 = arith.constant 1.280000e+02 : f32
    %102 = vector.broadcast %cst_46 : f32 to vector<16x1xf32>
    %103 = arith.divf %101, %102 : vector<16x1xf32>
    %104 = arith.mulf %98, %98 : vector<16x1xf32>
    %105 = arith.subf %103, %104 : vector<16x1xf32>
    %cst_47 = arith.constant 9.99999974E-6 : f32
    %106 = vector.broadcast %cst_47 : f32 to vector<16x1xf32>
    %107 = arith.addf %105, %106 : vector<16x1xf32>
    %108 = math.rsqrt %107 : vector<16x1xf32>
    %109 = vector.broadcast %98 : vector<16x1xf32> to vector<16x128xf32>
    %110 = arith.subf %94, %109 : vector<16x128xf32>
    %111 = vector.broadcast %108 : vector<16x1xf32> to vector<16x128xf32>
    %112 = arith.mulf %110, %111 : vector<16x128xf32>
    %113 = arith.truncf %112 : vector<16x128xf32> to vector<16x128xbf16>
    %c1_48 = arith.constant 1 : index
    %c0_49 = arith.constant 0 : index
    %c0_50 = arith.constant 0 : index
    %114 = vector.load %arg6[%c1_48, %c0_49, %c0_50] : memref<3x128x128xbf16, #tpu.memory_space<vmem>>, vector<1x128x128xbf16>
    %115 = vector.shape_cast %114 : vector<1x128x128xbf16> to vector<128x128xbf16>
    %cst_51 = arith.constant dense<0.000000e+00> : vector<16x128xf32>
    %116 = tpu.matmul %113, %115, %cst_51 {dimension_numbers = #tpu.dot_dimension_numbers<[1], [0], [0], [1], [0, 0, 1, 1], [], []>} : vector<16x128xbf16>, vector<128x128xbf16>, vector<16x128xf32> -> vector<16x128xf32>
    %c1_52 = arith.constant 1 : index
    %c0_53 = arith.constant 0 : index
    %c0_54 = arith.constant 0 : index
    %117 = vector.load %arg7[%c1_52, %c0_53, %c0_54] : memref<3x1x128xf32, #tpu.memory_space<vmem>>, vector<1x1x128xf32>
    %118 = vector.shape_cast %117 : vector<1x1x128xf32> to vector<1x128xf32>
    %119 = vector.broadcast %118 : vector<1x128xf32> to vector<16x128xf32>
    %120 = arith.addf %116, %119 : vector<16x128xf32>
    %121 = arith.addf %120, %65 : vector<16x128xf32>
    %cst_55 = arith.constant 1.000000e-01 : f32
    %122 = vector.broadcast %cst_55 : f32 to vector<16x128xf32>
    %123 = arith.mulf %122, %121 : vector<16x128xf32>
    %124 = arith.maximumf %121, %123 : vector<16x128xf32>
    %cst_56 = arith.constant dense<0.000000e+00> : vector<16xf32>
    %125 = vector.multi_reduction <add>, %124, %cst_56 [1] : vector<16x128xf32> to vector<16xf32>
    %126 = vector.shape_cast %125 : vector<16xf32> to vector<16x1xf32>
    %cst_57 = arith.constant 1.280000e+02 : f32
    %127 = vector.broadcast %cst_57 : f32 to vector<16x1xf32>
    %128 = arith.divf %126, %127 : vector<16x1xf32>
    %129 = arith.mulf %124, %124 : vector<16x128xf32>
    %cst_58 = arith.constant dense<0.000000e+00> : vector<16xf32>
    %130 = vector.multi_reduction <add>, %129, %cst_58 [1] : vector<16x128xf32> to vector<16xf32>
    %131 = vector.shape_cast %130 : vector<16xf32> to vector<16x1xf32>
    %cst_59 = arith.constant 1.280000e+02 : f32
    %132 = vector.broadcast %cst_59 : f32 to vector<16x1xf32>
    %133 = arith.divf %131, %132 : vector<16x1xf32>
    %134 = arith.mulf %128, %128 : vector<16x1xf32>
    %135 = arith.subf %133, %134 : vector<16x1xf32>
    %cst_60 = arith.constant 9.99999974E-6 : f32
    %136 = vector.broadcast %cst_60 : f32 to vector<16x1xf32>
    %137 = arith.addf %135, %136 : vector<16x1xf32>
    %138 = math.rsqrt %137 : vector<16x1xf32>
    %139 = vector.broadcast %128 : vector<16x1xf32> to vector<16x128xf32>
    %140 = arith.subf %124, %139 : vector<16x128xf32>
    %141 = vector.broadcast %138 : vector<16x1xf32> to vector<16x128xf32>
    %142 = arith.mulf %140, %141 : vector<16x128xf32>
    %143 = arith.truncf %142 : vector<16x128xf32> to vector<16x128xbf16>
    %c2 = arith.constant 2 : index
    %c0_61 = arith.constant 0 : index
    %c0_62 = arith.constant 0 : index
    %144 = vector.load %arg4[%c2, %c0_61, %c0_62] : memref<3x128x128xbf16, #tpu.memory_space<vmem>>, vector<1x128x128xbf16>
    %145 = vector.shape_cast %144 : vector<1x128x128xbf16> to vector<128x128xbf16>
    %cst_63 = arith.constant dense<0.000000e+00> : vector<16x128xf32>
    %146 = tpu.matmul %143, %145, %cst_63 {dimension_numbers = #tpu.dot_dimension_numbers<[1], [0], [0], [1], [0, 0, 1, 1], [], []>} : vector<16x128xbf16>, vector<128x128xbf16>, vector<16x128xf32> -> vector<16x128xf32>
    %c2_64 = arith.constant 2 : index
    %c0_65 = arith.constant 0 : index
    %c0_66 = arith.constant 0 : index
    %147 = vector.load %arg5[%c2_64, %c0_65, %c0_66] : memref<3x1x128xf32, #tpu.memory_space<vmem>>, vector<1x1x128xf32>
    %148 = vector.shape_cast %147 : vector<1x1x128xf32> to vector<1x128xf32>
    %149 = vector.broadcast %148 : vector<1x128xf32> to vector<16x128xf32>
    %150 = arith.addf %146, %149 : vector<16x128xf32>
    %cst_67 = arith.constant 1.000000e-01 : f32
    %151 = vector.broadcast %cst_67 : f32 to vector<16x128xf32>
    %152 = arith.mulf %151, %150 : vector<16x128xf32>
    %153 = arith.maximumf %150, %152 : vector<16x128xf32>
    %cst_68 = arith.constant dense<0.000000e+00> : vector<16xf32>
    %154 = vector.multi_reduction <add>, %153, %cst_68 [1] : vector<16x128xf32> to vector<16xf32>
    %155 = vector.shape_cast %154 : vector<16xf32> to vector<16x1xf32>
    %cst_69 = arith.constant 1.280000e+02 : f32
    %156 = vector.broadcast %cst_69 : f32 to vector<16x1xf32>
    %157 = arith.divf %155, %156 : vector<16x1xf32>
    %158 = arith.mulf %153, %153 : vector<16x128xf32>
    %cst_70 = arith.constant dense<0.000000e+00> : vector<16xf32>
    %159 = vector.multi_reduction <add>, %158, %cst_70 [1] : vector<16x128xf32> to vector<16xf32>
    %160 = vector.shape_cast %159 : vector<16xf32> to vector<16x1xf32>
    %cst_71 = arith.constant 1.280000e+02 : f32
    %161 = vector.broadcast %cst_71 : f32 to vector<16x1xf32>
    %162 = arith.divf %160, %161 : vector<16x1xf32>
    %163 = arith.mulf %157, %157 : vector<16x1xf32>
    %164 = arith.subf %162, %163 : vector<16x1xf32>
    %cst_72 = arith.constant 9.99999974E-6 : f32
    %165 = vector.broadcast %cst_72 : f32 to vector<16x1xf32>
    %166 = arith.addf %164, %165 : vector<16x1xf32>
    %167 = math.rsqrt %166 : vector<16x1xf32>
    %168 = vector.broadcast %157 : vector<16x1xf32> to vector<16x128xf32>
    %169 = arith.subf %153, %168 : vector<16x128xf32>
    %170 = vector.broadcast %167 : vector<16x1xf32> to vector<16x128xf32>
    %171 = arith.mulf %169, %170 : vector<16x128xf32>
    %172 = arith.truncf %171 : vector<16x128xf32> to vector<16x128xbf16>
    %c2_73 = arith.constant 2 : index
    %c0_74 = arith.constant 0 : index
    %c0_75 = arith.constant 0 : index
    %173 = vector.load %arg6[%c2_73, %c0_74, %c0_75] : memref<3x128x128xbf16, #tpu.memory_space<vmem>>, vector<1x128x128xbf16>
    %174 = vector.shape_cast %173 : vector<1x128x128xbf16> to vector<128x128xbf16>
    %cst_76 = arith.constant dense<0.000000e+00> : vector<16x128xf32>
    %175 = tpu.matmul %172, %174, %cst_76 {dimension_numbers = #tpu.dot_dimension_numbers<[1], [0], [0], [1], [0, 0, 1, 1], [], []>} : vector<16x128xbf16>, vector<128x128xbf16>, vector<16x128xf32> -> vector<16x128xf32>
    %c2_77 = arith.constant 2 : index
    %c0_78 = arith.constant 0 : index
    %c0_79 = arith.constant 0 : index
    %176 = vector.load %arg7[%c2_77, %c0_78, %c0_79] : memref<3x1x128xf32, #tpu.memory_space<vmem>>, vector<1x1x128xf32>
    %177 = vector.shape_cast %176 : vector<1x1x128xf32> to vector<1x128xf32>
    %178 = vector.broadcast %177 : vector<1x128xf32> to vector<16x128xf32>
    %179 = arith.addf %175, %178 : vector<16x128xf32>
    %180 = arith.addf %179, %124 : vector<16x128xf32>
    %cst_80 = arith.constant 1.000000e-01 : f32
    %181 = vector.broadcast %cst_80 : f32 to vector<16x128xf32>
    %182 = arith.mulf %181, %180 : vector<16x128xf32>
    %183 = arith.maximumf %180, %182 : vector<16x128xf32>
    %c0_81 = arith.constant 0 : index
    %c0_82 = arith.constant 0 : index
    %184 = vector.load %arg8[%c0_81, %c0_82] : memref<1x128xf32, #tpu.memory_space<vmem>>, vector<1x128xf32>
    %185 = vector.broadcast %184 : vector<1x128xf32> to vector<16x128xf32>
    %186 = arith.mulf %183, %185 : vector<16x128xf32>
    %cst_83 = arith.constant dense<0.000000e+00> : vector<16xf32>
    %187 = vector.multi_reduction <add>, %186, %cst_83 [1] : vector<16x128xf32> to vector<16xf32>
    %188 = vector.shape_cast %187 : vector<16xf32> to vector<16x1xf32>
    %c0_84 = arith.constant 0 : index
    %c0_85 = arith.constant 0 : index
    %189 = vector.load %arg9[%c0_84, %c0_85] : memref<1x1xf32, #tpu.memory_space<vmem>>, vector<1x1xf32>
    %190 = vector.broadcast %189 : vector<1x1xf32> to vector<16x1xf32>
    %191 = arith.addf %188, %190 : vector<16x1xf32>
    %c0_86 = arith.constant 0 : index
    %c0_87 = arith.constant 0 : index
    %192 = vector.load %arg10[%c0_86, %c0_87] : memref<16x1xf32, #tpu.memory_space<vmem>>, vector<16x1xf32>
    tpu.vector_store %arg10[%c0_86, %c0_87], %191 {strides = array<i32>} : memref<16x1xf32, #tpu.memory_space<vmem>>, vector<16x1xf32>,
    return
  }
  func.func @transform_0(%arg0: i32) -> (i32, i32) {
    %c0_i32 = arith.constant 0 : i32
    %c0_i32_0 = arith.constant 0 : i32
    return %arg0, %c0_i32 : i32, i32
  }
  func.func @transform_1(%arg0: i32) -> (i32, i32) {
    %c0_i32 = arith.constant 0 : i32
    %c0_i32_0 = arith.constant 0 : i32
    %c0_i32_1 = arith.constant 0 : i32
    return %c0_i32, %c0_i32_0 : i32, i32
  }
  func.func @transform_2(%arg0: i32) -> (i32, i32) {
    %c0_i32 = arith.constant 0 : i32
    %c0_i32_0 = arith.constant 0 : i32
    %c0_i32_1 = arith.constant 0 : i32
    return %c0_i32, %c0_i32_0 : i32, i32
  }
  func.func @transform_3(%arg0: i32) -> (i32, i32, i32) {
    %c0_i32 = arith.constant 0 : i32
    %c0_i32_0 = arith.constant 0 : i32
    %c0_i32_1 = arith.constant 0 : i32
    %c0_i32_2 = arith.constant 0 : i32
    return %c0_i32, %c0_i32_0, %c0_i32_1 : i32, i32, i32
  }
  func.func @transform_4(%arg0: i32) -> (i32, i32, i32) {
    %c0_i32 = arith.constant 0 : i32
    %c0_i32_0 = arith.constant 0 : i32
    %c0_i32_1 = arith.constant 0 : i32
    %c0_i32_2 = arith.constant 0 : i32
    return %c0_i32, %c0_i32_0, %c0_i32_1 : i32, i32, i32
  }
  func.func @transform_5(%arg0: i32) -> (i32, i32, i32) {
    %c0_i32 = arith.constant 0 : i32
    %c0_i32_0 = arith.constant 0 : i32
    %c0_i32_1 = arith.constant 0 : i32
    %c0_i32_2 = arith.constant 0 : i32
    return %c0_i32, %c0_i32_0, %c0_i32_1 : i32, i32, i32
  }
  func.func @transform_6(%arg0: i32) -> (i32, i32, i32) {
    %c0_i32 = arith.constant 0 : i32
    %c0_i32_0 = arith.constant 0 : i32
    %c0_i32_1 = arith.constant 0 : i32
    %c0_i32_2 = arith.constant 0 : i32
    return %c0_i32, %c0_i32_0, %c0_i32_1 : i32, i32, i32
  }
  func.func @transform_7(%arg0: i32) -> (i32, i32) {
    %c0_i32 = arith.constant 0 : i32
    %c0_i32_0 = arith.constant 0 : i32
    %c0_i32_1 = arith.constant 0 : i32
    return %c0_i32, %c0_i32_0 : i32, i32
  }
  func.func @transform_8(%arg0: i32) -> (i32, i32) {
    %c0_i32 = arith.constant 0 : i32
    %c0_i32_0 = arith.constant 0 : i32
    %c0_i32_1 = arith.constant 0 : i32
    return %c0_i32, %c0_i32_0 : i32, i32
  }
  func.func @transform_9(%arg0: i32) -> (i32, i32) {
    %c0_i32 = arith.constant 0 : i32
    %c0_i32_0 = arith.constant 0 : i32
    return %arg0, %c0_i32 : i32, i32
  }
}

</mosaic_0001>

<bundles_post_ra>
// kernel: simple_model_forward.1
= control target key start
LH: loop header
LB: loop body
LE: loop exit
PB: predicated region body
PF: predicated region fallthrough
CT: control target
= control target key end

     0   :  { %s1609_s0 = inlined_call_operand.hbm [shape: f32[16,32], index: 0, kind: input, shape index: {}]   ;;  %s1610_s1 = inlined_call_operand.hbm [shape: bf16[32,128], index: 1, kind: input, shape index: {}]   ;;  %s1611_s2 = inlined_call_operand.vmem [shape: f32[1,128], index: 2, kind: input, shape index: {}]   ;;  %s1612_s3 = inlined_call_operand.hbm [shape: bf16[3,128,128], index: 3, kind: input, shape index: {}]   ;;  %s1613_s4 = inlined_call_operand.hbm [shape: f32[3,1,128], index: 4, kind: input, shape index: {}]   ;;  %s1614_s5 = inlined_call_operand.hbm [shape: bf16[3,128,128], index: 5, kind: input, shape index: {}]   ;;  %s1615_s6 = inlined_call_operand.vmem [shape: f32[3,1,128], index: 6, kind: input, shape index: {}]   ;;  %s1616_s7 = inlined_call_operand.vmem [shape: f32[1,128], index: 7, kind: input, shape index: {}]   ;;  %s1617_s8 = inlined_call_operand.<no memory space> [shape: f32[1,1], index: 8, kind: input, shape index: {}]   ;;  %s1618_s9 = inlined_call_operand.vmem [shape: f32[16,1], index: 9, kind: output, shape index: {}]  }
   0x1   :  { %v14_v0 = vstv %s1617_s8 }
   0x2   :  { %15 = vst [vmem:[#allocation2] sm:$0x1] %v14_v0 }
   0x3   :  { %16 = vsyncpa [#allocation4], 0 }
   0x4   :  { %17 = vsyncpa [#allocation6], 0  ;;  %s36_s13 = sshll.u32 %s1610_s1, 4  ;;  %s37_s13 = int_to_ptr.hbm [resolvable:$true] %s36_s13 }
   0x5   :  { %18 = vsyncpa [#allocation9], 0  ;;  %s1413_s14 = smov [#allocation5]   ;;  %s64_s18 = sshll.u32 %s1613_s4, 4  ;;  %s65_s18 = int_to_ptr.hbm [resolvable:$true] %s64_s18 }
   0x6   :  { %s38_s15 = sshll.u32 %s1413_s14, 4  ;;  %s1414_s19 = smov 64   ;;  %s39_s15 = int_to_ptr.vmem [resolvable:$true] %s38_s15 }
   0x7   :  { %s1415_s20 = smov 4   ;;  %s1416_s8 = smov [#allocation8]  }
   0x8   :  { %44 = dma.hbm_to_vmem [thread:$0]  %s37_s13, 256, %s39_s15, [#allocation6], %s1414_s19, %s1414_s19, %s1415_s20  }
   0x9   :  { %s66_s21 = sshll.u32 %s1416_s8, 4  ;;  %s1417_s1 = smov 16   ;;  %s67_s21 = int_to_ptr.vmem [resolvable:$true] %s66_s21 }
   0xa   :  { %s1418_s22 = smov 1   ;;  %s23_s25 = sshll.u32 %s1609_s0, 4  ;;  %s24_s25 = int_to_ptr.hbm [resolvable:$true] %s23_s25 }
   0xb   :  { %72 = dma.hbm_to_vmem [thread:$0]  %s65_s18, 48, %s67_s21, [#allocation9], %s1417_s1, %s1417_s1, %s1418_s22  }
   0xc   :  { %s1419_s26 = smov [#allocation3]   ;;  %s51_s29 = sshll.u32 %s1612_s3, 4  ;;  %s52_s29 = int_to_ptr.hbm [resolvable:$true] %s51_s29 }
   0xd   :  { %s25_s4 = sshll.u32 %s1419_s26, 4  ;;  %s1420_s30 = smov 128   ;;  %s26_s4 = int_to_ptr.vmem [resolvable:$true] %s25_s4 }
   0xe   :  { %s1421_s10 = smov 8   ;;  %s1422_s11 = smov [#allocation7]  }
   0xf   :  { %31 = dma.hbm_to_vmem [thread:$0]  %s24_s25, 256, %s26_s4, [#allocation4], %s1420_s30, %s1420_s30, %s1421_s10  }
  0x10   :  { %s53_s12 = sshll.u32 %s1422_s11, 4  ;;  %s77_s15 = sshll.u32 %s1614_s5, 4  ;;  %s54_s12 = int_to_ptr.vmem [resolvable:$true] %s53_s12  ;;  %s78_s15 = int_to_ptr.hbm [resolvable:$true] %s77_s15 }
  0x11   :  { %59 = dma.hbm_to_vmem [thread:$0]  %s52_s29, 3072, %s54_s12, [#allocation6], %s1414_s19, %s1414_s19, %s1415_s20  }
  0x12   :  { %s1423_s0 = smov [#allocation10]  }
  0x13   :  { %s79_s16 = sshll.u32 %s1423_s0, 4  ;;  %s80_s16 = int_to_ptr.vmem [resolvable:$true] %s79_s16 }
  0x14   :  { %85 = dma.hbm_to_vmem [thread:$0]  %s78_s15, 3072, %s80_s16, [#allocation9], %s1414_s19, %s1414_s19, %s1415_s20  }
  0x15   :  { %1407 = dma.done.wait [#allocation4], 256  }
  0x16   :  { %1408 = vsyncadd [#allocation4], 4294967040 }
  0x17   :  { %1409 = dma.done.wait [#allocation6], 3328  }
  0x18   :  { %1410 = vsyncadd [#allocation6], 4294963968 }
  0x19   :  { %1411 = dma.done.wait [#allocation9], 3120  }
  0x1a   :  { %1412 = vsyncadd [#allocation9], 4294964176  ;;  %v1191_v1 = vld [vmem:[#allocation5 + $0x8] sm:$0xff]  ;;  %v1190_v2 = vld [vmem:[#allocation5] sm:$0xff]  ;;  %vm136_vm0 = vcmask 261120   ;;  %v1424_v13 = vmov 128.0  }
  0x1b   :  { %v113_v3 = vld [vmem:[#allocation3] sm:$0xff]  ;;  %v114_v4 = vld [vmem:[#allocation3 + $0x8] sm:$0xff]  ;;  %146 = vmatpush.bf16.msra.mxu0 %v1191_v1  ;;  %v1252_v6 = vld [vmem:[%s1611_s2] ss:$0 sm:$0xff]  ;;  %1261 = vrcp.f32 %v1424_v13 }
  0x1c   :  { %v115_v5 = vpack.c.bf16 %v114_v4, %v113_v3  ;;  %v1199_v14 = vld [vmem:[#allocation7 + $0x38] sm:$0xff]  ;;  %v1198_v15 = vld [vmem:[#allocation7 + $0x30] sm:$0xff]  ;;  %v1197_v18 = vld [vmem:[#allocation7 + $0x28] sm:$0xff] }
  0x1d   :  { %274 = vmatpush.bf16.msra.mxu1 %v1199_v14  ;;  %v1196_v20 = vld [vmem:[#allocation7 + $0x20] sm:$0xff]  ;;  %v1195_v22 = vld [vmem:[#allocation7 + $0x18] sm:$0xff]  ;;  %v1194_v24 = vld [vmem:[#allocation7 + $0x10] sm:$0xff] }
  0x1e   :  { %v1193_v26 = vld [vmem:[#allocation7 + $0x8] sm:$0xff]  ;;  %v1192_v28 = vld [vmem:[#allocation7] sm:$0xff] }
  0x1f   :  { %147 = vmatpush.bf16.msra.mxu0 %v1190_v2  ;;  %v1253_v61 = vld [vmem:[#allocation8] ss:$0 sm:$0xff]  ;;  %v1204_v13 = vld [vmem:[#allocation10 + $0x20] sm:$0xff] }
  0x20   :  { %v1203_v14 = vld [vmem:[#allocation10 + $0x18] sm:$0xff] }
  0x21   :  { %v1262_v16 = vpop.eup %1261  ;;  %275 = vmatpush.bf16.msra.mxu1 %v1198_v15  ;;  %v1202_v15 = vld [vmem:[#allocation10 + $0x10] sm:$0xff] }
  0x22   :  { %995 = vmatmul.msk.bf16.vlgmr.msra.gmra.mxu0 %vm136_vm0, %v115_v5  ;;  %v159_v17 = vmul.f32 128.0, %v1262_v16  ;;  %vm163_vm1 = vweird.f32 %v1262_v16 }
  0x24   :  { %v160_v19 = vsub.f32 1.0, %v159_v17 }
  0x25   :  { %276 = vmatpush.bf16.msra.mxu1 %v1197_v18  ;;  %v1200_v18 = vld [vmem:[#allocation10] sm:$0xff] }
  0x26   :  { %v161_v21 = vmul.f32 %v1262_v16, %v160_v19 }
  0x28   :  { %v162_v23 = vadd.f32 %v1262_v16, %v161_v21 }
  0x29   :  { %277 = vmatpush.bf16.msra.mxu1 %v1196_v20 }
  0x2a   :  { %v1515_v25 = vsel %vm163_vm1, %v1262_v16, %v162_v23  ;;  %v1201_v16 = vld [vmem:[#allocation10 + $0x8] sm:$0xff] }
  0x2d   :  { %278 = vmatpush.bf16.msra.mxu1 %v1195_v22 }
  0x31   :  { %279 = vmatpush.bf16.msra.mxu1 %v1194_v24 }
  0x35   :  { %280 = vmatpush.bf16.msra.mxu1 %v1193_v26 }
  0x39   :  { %281 = vmatpush.bf16.msra.mxu1 %v1192_v28 }
  0x9f   :  { %v149_v7 = vpop.f32.mrf.mxu0 }
  0xa0   :  { %v1505_v8 = vadd.f32 %v1252_v6, %v149_v7 }
  0xa2   :  { %154 = vadd.xlane.f32.xlu0 %v1505_v8  ;;  %v167_v9 = vmul.f32 %v1505_v8, %v1505_v8 }
  0xa4   :  { %169 = vadd.xlane.f32.xlu1 %v167_v9  ;;  %v1207_v9 = vld [vmem:[#allocation10 + $0x38] sm:$0xff] }
  0xa5   :  { %405 = vmatpush.bf16.msra.mxu2 %v1207_v9 }
  0xa7   :  { %v151_v10 = vpop.f32.mrf.mxu0 }
  0xa8   :  { %v1510_v11 = vadd.f32 %v1252_v6, %v151_v10  ;;  %v1206_v10 = vld [vmem:[#allocation10 + $0x30] sm:$0xff] }
  0xa9   :  { %406 = vmatpush.bf16.msra.mxu2 %v1206_v10 }
  0xaa   :  { %156 = vadd.xlane.f32.xlu0 %v1510_v11  ;;  %v168_v12 = vmul.f32 %v1510_v11, %v1510_v11 }
  0xac   :  { %171 = vadd.xlane.f32.xlu1 %v168_v12  ;;  %v1205_v12 = vld [vmem:[#allocation10 + $0x28] sm:$0xff] }
  0xad   :  { %407 = vmatpush.bf16.msra.mxu2 %v1205_v12 }
  0xb1   :  { %408 = vmatpush.bf16.msra.mxu2 %v1204_v13 }
  0xb5   :  { %409 = vmatpush.bf16.msra.mxu2 %v1203_v14 }
  0xb9   :  { %410 = vmatpush.bf16.msra.mxu2 %v1202_v15 }
  0xbd   :  { %411 = vmatpush.bf16.msra.mxu2 %v1201_v16 }
  0xc1   :  { %412 = vmatpush.bf16.msra.mxu2 %v1200_v18 }
 0x115   :  { %v155_v27 = vpop.xlane.xlu0 %154 }
 0x116   :  { %v165_v29 = vmul.f32 %v1515_v25, %v155_v27 }
 0x117   :  { %v170_v30 = vpop.xlane.xlu1 %169 }
 0x118   :  { %v175_v31 = vmul.f32 %v165_v29, %v165_v29  ;;  %v173_v32 = vmul.f32 %v170_v30, %v1515_v25  ;;  %v201_v55 = vsub.f32 %v1505_v8, %v165_v29 }
 0x11a   :  { %v177_v33 = vsub.f32 %v173_v32, %v175_v31 }
 0x11c   :  { %v179_v34 = vadd.f32 1e-05, %v177_v33 }
 0x11d   :  { %v157_v35 = vpop.xlane.xlu0 %156 }
 0x11e   :  { %1263 = vrsqrt.f32 %v179_v34  ;;  %v166_v36 = vmul.f32 %v1515_v25, %v157_v35  ;;  %vm187_vm3 = vweird.f32 %v179_v34 }
 0x11f   :  { %v172_v37 = vpop.xlane.xlu1 %171 }
 0x120   :  { %v176_v38 = vmul.f32 %v166_v36, %v166_v36  ;;  %v174_v39 = vmul.f32 %v172_v37, %v1515_v25  ;;  %v202_v56 = vsub.f32 %v1510_v11, %v166_v36 }
 0x122   :  { %v178_v40 = vsub.f32 %v174_v39, %v176_v38 }
 0x124   :  { %v1264_v41 = vpop.eup %1263  ;;  %v180_v42 = vadd.f32 1e-05, %v178_v40 }
 0x125   :  { %v182_v43 = vmul.f32 %v1264_v41, %v179_v34  ;;  %vm188_vm2 = vweird.f32 %v1264_v41 }
 0x126   :  { %1265 = vrsqrt.f32 %v180_v42  ;;  %vm189_vm5 = vmor %vm187_vm3, %vm188_vm2  ;;  %vm197_vm6 = vweird.f32 %v180_v42 }
 0x127   :  { %v183_v44 = vmul.f32 %v1264_v41, %v182_v43 }
 0x129   :  { %v184_v45 = vmul.f32 0.5, %v183_v44 }
 0x12b   :  { %v185_v47 = vsub.f32 1.5, %v184_v45 }
 0x12c   :  { %v1266_v46 = vpop.eup %1265 }
 0x12d   :  { %v192_v48 = vmul.f32 %v1266_v46, %v180_v42  ;;  %v186_v51 = vmul.f32 %v1264_v41, %v185_v47  ;;  %vm198_vm4 = vweird.f32 %v1266_v46 }
 0x12e   :  { %vm199_vm7 = vmor %vm197_vm6, %vm198_vm4 }
 0x12f   :  { %v193_v49 = vmul.f32 %v1266_v46, %v192_v48  ;;  %v190_v53 = vsel %vm189_vm5, %v1264_v41, %v186_v51 }
 0x130   :  { %v203_v58 = vmul.f32 %v201_v55, %v190_v53 }
 0x131   :  { %v194_v50 = vmul.f32 0.5, %v193_v49 }
 0x133   :  { %v195_v52 = vsub.f32 1.5, %v194_v50 }
 0x135   :  { %v196_v54 = vmul.f32 %v1266_v46, %v195_v52  ;;  %v1254_v52 = vld [vmem:[%s1615_s6] ss:$0 sm:$0xff] }
 0x137   :  { %v200_v57 = vsel %vm199_vm7, %v1266_v46, %v196_v54 }
 0x138   :  { %v204_v59 = vmul.f32 %v202_v56, %v200_v57 }
 0x13a   :  { %v205_v60 = vpack.c.bf16 %v204_v59, %v203_v58 }
 0x13c   :  { %282 = vmatmul.bf16.vlgmr.msra.gmra.mxu1 %v205_v60 }
 0x1b9   :  { %v283_v62 = vpop.f32.mrf.mxu1 }
 0x1ba   :  { %v284_v63 = vadd.f32 %v1253_v61, %v283_v62 }
 0x1bc   :  { %v288_v0 = vmul.f32 0.1, %v284_v63 }
 0x1be   :  { %v1523_v1 = vmax.f32 %v284_v63, %v288_v0  ;;  %v1215_v0 = vld [vmem:[#allocation7 + $0x78] sm:$0xff] }
 0x1bf   :  { %540 = vmatpush.bf16.msra.mxu3 %v1215_v0 }
 0x1c0   :  { %292 = vadd.xlane.f32.xlu2 %v1523_v1  ;;  %v298_v2 = vmul.f32 %v1523_v1, %v1523_v1 }
 0x1c1   :  { %v285_v3 = vpop.f32.mrf.mxu1 }
 0x1c2   :  { %v286_v4 = vadd.f32 %v1253_v61, %v285_v3  ;;  %300 = vadd.xlane.f32.xlu0 %v298_v2  ;;  %v1213_v2 = vld [vmem:[#allocation7 + $0x68] sm:$0xff]  ;;  %v1212_v3 = vld [vmem:[#allocation7 + $0x60] sm:$0xff] }
 0x1c4   :  { %v289_v5 = vmul.f32 0.1, %v286_v4 }
 0x1c6   :  { %v291_v6 = vmax.f32 %v286_v4, %v289_v5  ;;  %v1211_v4 = vld [vmem:[#allocation7 + $0x58] sm:$0xff]  ;;  %v1209_v5 = vld [vmem:[#allocation7 + $0x48] sm:$0xff] }
 0x1c8   :  { %294 = vadd.xlane.f32.xlu2 %v291_v6  ;;  %v299_v7 = vmul.f32 %v291_v6, %v291_v6 }
 0x1ca   :  { %302 = vadd.xlane.f32.xlu1 %v299_v7  ;;  %v1208_v7 = vld [vmem:[#allocation7 + $0x40] sm:$0xff] }
 0x233   :  { %v293_v17 = vpop.xlane.xlu2 %292 }
 0x234   :  { %v296_v19 = vmul.f32 %v293_v17, %v1515_v25 }
 0x235   :  { %v301_v20 = vpop.xlane.xlu0 %300 }
 0x236   :  { %v306_v21 = vmul.f32 %v296_v19, %v296_v19  ;;  %v304_v22 = vmul.f32 %v301_v20, %v1515_v25  ;;  %v332_v46 = vsub.f32 %v1523_v1, %v296_v19  ;;  %v1214_v1 = vld [vmem:[#allocation7 + $0x70] sm:$0xff] }
 0x237   :  { %541 = vmatpush.bf16.msra.mxu3 %v1214_v1 }
 0x238   :  { %v308_v23 = vsub.f32 %v304_v22, %v306_v21 }
 0x23a   :  { %v310_v24 = vadd.f32 1e-05, %v308_v23 }
 0x23b   :  { %v295_v26 = vpop.xlane.xlu2 %294  ;;  %542 = vmatpush.bf16.msra.mxu3 %v1213_v2 }
 0x23c   :  { %1267 = vrsqrt.f32 %v310_v24  ;;  %v297_v27 = vmul.f32 %v295_v26, %v1515_v25  ;;  %vm318_vm9 = vweird.f32 %v310_v24 }
 0x23d   :  { %v303_v28 = vpop.xlane.xlu1 %302 }
 0x23e   :  { %v307_v29 = vmul.f32 %v297_v27, %v297_v27  ;;  %v305_v30 = vmul.f32 %v303_v28, %v1515_v25  ;;  %v333_v47 = vsub.f32 %v291_v6, %v297_v27 }
 0x23f   :  { %543 = vmatpush.bf16.msra.mxu3 %v1212_v3 }
 0x240   :  { %v309_v31 = vsub.f32 %v305_v30, %v307_v29 }
 0x242   :  { %v1268_v32 = vpop.eup %1267  ;;  %v311_v33 = vadd.f32 1e-05, %v309_v31 }
 0x243   :  { %v313_v34 = vmul.f32 %v1268_v32, %v310_v24  ;;  %vm319_vm8 = vweird.f32 %v1268_v32  ;;  %544 = vmatpush.bf16.msra.mxu3 %v1211_v4 }
 0x244   :  { %1269 = vrsqrt.f32 %v311_v33  ;;  %vm320_vm11 = vmor %vm318_vm9, %vm319_vm8  ;;  %vm328_vm12 = vweird.f32 %v311_v33 }
 0x245   :  { %v314_v35 = vmul.f32 %v1268_v32, %v313_v34 }
 0x247   :  { %v315_v36 = vmul.f32 0.5, %v314_v35 }
 0x249   :  { %v316_v38 = vsub.f32 1.5, %v315_v36 }
 0x24a   :  { %v1270_v37 = vpop.eup %1269 }
 0x24b   :  { %v323_v39 = vmul.f32 %v1270_v37, %v311_v33  ;;  %v317_v42 = vmul.f32 %v1268_v32, %v316_v38  ;;  %vm329_vm10 = vweird.f32 %v1270_v37 }
 0x24c   :  { %vm330_vm13 = vmor %vm328_vm12, %vm329_vm10 }
 0x24d   :  { %v324_v40 = vmul.f32 %v1270_v37, %v323_v39  ;;  %v321_v44 = vsel %vm320_vm11, %v1268_v32, %v317_v42 }
 0x24e   :  { %v334_v49 = vmul.f32 %v332_v46, %v321_v44 }
 0x24f   :  { %v325_v41 = vmul.f32 0.5, %v324_v40 }
 0x251   :  { %v326_v43 = vsub.f32 1.5, %v325_v41 }
 0x253   :  { %v327_v45 = vmul.f32 %v1270_v37, %v326_v43  ;;  %v1255_v43 = vld [vmem:[#allocation8 + $0x1] ss:$0 sm:$0xff] }
 0x255   :  { %v331_v48 = vsel %vm330_vm13, %v1270_v37, %v327_v45 }
 0x256   :  { %v335_v50 = vmul.f32 %v333_v47, %v331_v48 }
 0x258   :  { %v336_v51 = vpack.c.bf16 %v335_v50, %v334_v49 }
 0x25a   :  { %413 = vmatmul.bf16.vlgmr.msra.gmra.mxu2 %v336_v51 }
 0x2dd   :  { %v414_v53 = vpop.f32.mrf.mxu2 }
 0x2de   :  { %v415_v54 = vadd.f32 %v1254_v52, %v414_v53 }
 0x2e0   :  { %v419_v55 = vadd.f32 %v415_v54, %v1505_v8  ;;  %v1223_v54 = vld [vmem:[#allocation10 + $0x78] sm:$0xff] }
 0x2e1   :  { %673 = vmatpush.bf16.msrb.mxu0 %v1223_v54 }
 0x2e2   :  { %v421_v56 = vmul.f32 0.1, %v419_v55 }
 0x2e4   :  { %v1537_v57 = vmax.f32 %v419_v55, %v421_v56  ;;  %v1222_v55 = vld [vmem:[#allocation10 + $0x70] sm:$0xff]  ;;  %v1221_v56 = vld [vmem:[#allocation10 + $0x68] sm:$0xff] }
 0x2e5   :  { %v416_v58 = vpop.f32.mrf.mxu2  ;;  %674 = vmatpush.bf16.msrb.mxu0 %v1222_v55 }
 0x2e6   :  { %v417_v59 = vadd.f32 %v1254_v52, %v416_v58  ;;  %425 = vadd.xlane.f32.xlu2 %v1537_v57  ;;  %v431_v60 = vmul.f32 %v1537_v57, %v1537_v57  ;;  %v1220_v58 = vld [vmem:[#allocation10 + $0x60] sm:$0xff] }
 0x2e8   :  { %v420_v61 = vadd.f32 %v417_v59, %v1510_v11  ;;  %433 = vadd.xlane.f32.xlu1 %v431_v60  ;;  %v1210_v11 = vld [vmem:[#allocation7 + $0x50] sm:$0xff]  ;;  %v1219_v59 = vld [vmem:[#allocation10 + $0x58] sm:$0xff] }
 0x2e9   :  { %545 = vmatpush.bf16.msra.mxu3 %v1210_v11  ;;  %675 = vmatpush.bf16.msrb.mxu0 %v1221_v56  ;;  %v1218_v60 = vld [vmem:[#allocation10 + $0x50] sm:$0xff] }
 0x2ea   :  { %v422_v62 = vmul.f32 0.1, %v420_v61 }
 0x2ec   :  { %v1543_v63 = vmax.f32 %v420_v61, %v422_v62  ;;  %v1217_v61 = vld [vmem:[#allocation10 + $0x48] sm:$0xff] }
 0x2ed   :  { %546 = vmatpush.bf16.msra.mxu3 %v1209_v5  ;;  %676 = vmatpush.bf16.msrb.mxu0 %v1220_v58 }
 0x2ee   :  { %427 = vadd.xlane.f32.xlu0 %v1543_v63  ;;  %v432_v8 = vmul.f32 %v1543_v63, %v1543_v63 }
 0x2f0   :  { %435 = vadd.xlane.f32.xlu2 %v432_v8  ;;  %v1216_v8 = vld [vmem:[#allocation10 + $0x40] sm:$0xff] }
 0x2f1   :  { %547 = vmatpush.bf16.msra.mxu3 %v1208_v7  ;;  %677 = vmatpush.bf16.msrb.mxu0 %v1219_v59 }
 0x2f5   :  { %678 = vmatpush.bf16.msrb.mxu0 %v1218_v60 }
 0x2f9   :  { %679 = vmatpush.bf16.msrb.mxu0 %v1217_v61 }
 0x2fd   :  { %680 = vmatpush.bf16.msrb.mxu0 %v1216_v8 }
 0x359   :  { %v426_v6 = vpop.xlane.xlu2 %425 }
 0x35a   :  { %v429_v9 = vmul.f32 %v426_v6, %v1515_v25 }
 0x35b   :  { %v434_v10 = vpop.xlane.xlu1 %433 }
 0x35c   :  { %v439_v12 = vmul.f32 %v429_v9, %v429_v9  ;;  %v437_v13 = vmul.f32 %v434_v10, %v1515_v25  ;;  %v465_v37 = vsub.f32 %v1537_v57, %v429_v9 }
 0x35e   :  { %v441_v14 = vsub.f32 %v437_v13, %v439_v12 }
 0x360   :  { %v443_v15 = vadd.f32 1e-05, %v441_v14 }
 0x361   :  { %v428_v16 = vpop.xlane.xlu0 %427 }
 0x362   :  { %1271 = vrsqrt.f32 %v443_v15  ;;  %v430_v17 = vmul.f32 %v428_v16, %v1515_v25  ;;  %vm451_vm15 = vweird.f32 %v443_v15 }
 0x363   :  { %v436_v18 = vpop.xlane.xlu2 %435 }
 0x364   :  { %v440_v19 = vmul.f32 %v430_v17, %v430_v17  ;;  %v438_v20 = vmul.f32 %v436_v18, %v1515_v25  ;;  %v466_v38 = vsub.f32 %v1543_v63, %v430_v17 }
 0x366   :  { %v442_v21 = vsub.f32 %v438_v20, %v440_v19 }
 0x368   :  { %v1272_v22 = vpop.eup %1271  ;;  %v444_v23 = vadd.f32 1e-05, %v442_v21 }
 0x369   :  { %v446_v24 = vmul.f32 %v1272_v22, %v443_v15  ;;  %vm452_vm14 = vweird.f32 %v1272_v22 }
 0x36a   :  { %1273 = vrsqrt.f32 %v444_v23  ;;  %vm453_vm1 = vmor %vm451_vm15, %vm452_vm14  ;;  %vm461_vm2 = vweird.f32 %v444_v23 }
 0x36b   :  { %v447_v26 = vmul.f32 %v1272_v22, %v446_v24 }
 0x36d   :  { %v448_v27 = vmul.f32 0.5, %v447_v26 }
 0x36f   :  { %v449_v29 = vsub.f32 1.5, %v448_v27 }
 0x370   :  { %v1274_v28 = vpop.eup %1273 }
 0x371   :  { %v456_v30 = vmul.f32 %v1274_v28, %v444_v23  ;;  %v450_v33 = vmul.f32 %v1272_v22, %v449_v29  ;;  %vm462_vm0 = vweird.f32 %v1274_v28 }
 0x372   :  { %vm463_vm3 = vmor %vm461_vm2, %vm462_vm0 }
 0x373   :  { %v457_v31 = vmul.f32 %v1274_v28, %v456_v30  ;;  %v454_v35 = vsel %vm453_vm1, %v1272_v22, %v450_v33 }
 0x374   :  { %v467_v40 = vmul.f32 %v465_v37, %v454_v35 }
 0x375   :  { %v458_v32 = vmul.f32 0.5, %v457_v31 }
 0x377   :  { %v459_v34 = vsub.f32 1.5, %v458_v32 }
 0x379   :  { %v460_v36 = vmul.f32 %v1274_v28, %v459_v34  ;;  %v1256_v34 = vld [vmem:[%s1615_s6 + $0x1] ss:$0 sm:$0xff] }
 0x37b   :  { %v464_v39 = vsel %vm463_vm3, %v1274_v28, %v460_v36 }
 0x37c   :  { %v468_v41 = vmul.f32 %v466_v38, %v464_v39 }
 0x37e   :  { %v469_v42 = vpack.c.bf16 %v468_v41, %v467_v40 }
 0x380   :  { %548 = vmatmul.bf16.vlgmr.msra.gmra.mxu3 %v469_v42 }
 0x403   :  { %v549_v44 = vpop.f32.mrf.mxu3 }
 0x404   :  { %v550_v45 = vadd.f32 %v1255_v43, %v549_v44 }
 0x406   :  { %v554_v46 = vmul.f32 0.1, %v550_v45 }
 0x408   :  { %v1554_v47 = vmax.f32 %v550_v45, %v554_v46  ;;  %v1231_v46 = vld [vmem:[#allocation7 + $0xb8] sm:$0xff] }
 0x409   :  { %808 = vmatpush.bf16.msrb.mxu1 %v1231_v46 }
 0x40a   :  { %558 = vadd.xlane.f32.xlu0 %v1554_v47  ;;  %v564_v48 = vmul.f32 %v1554_v47, %v1554_v47 }
 0x40b   :  { %v551_v49 = vpop.f32.mrf.mxu3 }
 0x40c   :  { %v552_v50 = vadd.f32 %v1255_v43, %v551_v49  ;;  %566 = vadd.xlane.f32.xlu2 %v564_v48  ;;  %v1229_v48 = vld [vmem:[#allocation7 + $0xa8] sm:$0xff]  ;;  %v1228_v49 = vld [vmem:[#allocation7 + $0xa0] sm:$0xff] }
 0x40e   :  { %v555_v51 = vmul.f32 0.1, %v552_v50 }
 0x410   :  { %v557_v52 = vmax.f32 %v552_v50, %v555_v51  ;;  %v1227_v50 = vld [vmem:[#allocation7 + $0x98] sm:$0xff]  ;;  %v1225_v51 = vld [vmem:[#allocation7 + $0x88] sm:$0xff] }
 0x412   :  { %560 = vadd.xlane.f32.xlu1 %v557_v52  ;;  %v565_v53 = vmul.f32 %v557_v52, %v557_v52 }
 0x414   :  { %568 = vadd.xlane.f32.xlu0 %v565_v53  ;;  %v1224_v53 = vld [vmem:[#allocation7 + $0x80] sm:$0xff] }
 0x47d   :  { %v559_v62 = vpop.xlane.xlu0 %558 }
 0x47e   :  { %v562_v0 = vmul.f32 %v559_v62, %v1515_v25 }
 0x47f   :  { %v567_v1 = vpop.xlane.xlu2 %566 }
 0x480   :  { %v572_v2 = vmul.f32 %v562_v0, %v562_v0  ;;  %v570_v3 = vmul.f32 %v567_v1, %v1515_v25  ;;  %v598_v28 = vsub.f32 %v1554_v47, %v562_v0  ;;  %v1230_v47 = vld [vmem:[#allocation7 + $0xb0] sm:$0xff] }
 0x481   :  { %809 = vmatpush.bf16.msrb.mxu1 %v1230_v47 }
 0x482   :  { %v574_v4 = vsub.f32 %v570_v3, %v572_v2 }
 0x484   :  { %v576_v11 = vadd.f32 1e-05, %v574_v4 }
 0x485   :  { %v561_v5 = vpop.xlane.xlu1 %560  ;;  %810 = vmatpush.bf16.msrb.mxu1 %v1229_v48 }
 0x486   :  { %1275 = vrsqrt.f32 %v576_v11  ;;  %v563_v6 = vmul.f32 %v561_v5, %v1515_v25  ;;  %vm584_vm5 = vweird.f32 %v576_v11 }
 0x487   :  { %v569_v7 = vpop.xlane.xlu0 %568 }
 0x488   :  { %v573_v9 = vmul.f32 %v563_v6, %v563_v6  ;;  %v571_v10 = vmul.f32 %v569_v7, %v1515_v25  ;;  %v599_v29 = vsub.f32 %v557_v52, %v563_v6 }
 0x489   :  { %811 = vmatpush.bf16.msrb.mxu1 %v1228_v49 }
 0x48a   :  { %v575_v12 = vsub.f32 %v571_v10, %v573_v9 }
 0x48c   :  { %v1276_v13 = vpop.eup %1275  ;;  %v577_v14 = vadd.f32 1e-05, %v575_v12 }
 0x48d   :  { %v579_v15 = vmul.f32 %v1276_v13, %v576_v11  ;;  %vm585_vm4 = vweird.f32 %v1276_v13  ;;  %812 = vmatpush.bf16.msrb.mxu1 %v1227_v50 }
 0x48e   :  { %1277 = vrsqrt.f32 %v577_v14  ;;  %vm586_vm7 = vmor %vm584_vm5, %vm585_vm4  ;;  %vm594_vm8 = vweird.f32 %v577_v14 }
 0x48f   :  { %v580_v16 = vmul.f32 %v1276_v13, %v579_v15 }
 0x491   :  { %v581_v17 = vmul.f32 0.5, %v580_v16 }
 0x493   :  { %v582_v19 = vsub.f32 1.5, %v581_v17 }
 0x494   :  { %v1278_v18 = vpop.eup %1277 }
 0x495   :  { %v589_v20 = vmul.f32 %v1278_v18, %v577_v14  ;;  %v583_v23 = vmul.f32 %v1276_v13, %v582_v19  ;;  %vm595_vm6 = vweird.f32 %v1278_v18 }
 0x496   :  { %vm596_vm9 = vmor %vm594_vm8, %vm595_vm6  ;;  %vm977_vm6 = vcmask 7168  }
 0x497   :  { %v590_v21 = vmul.f32 %v1278_v18, %v589_v20  ;;  %v587_v26 = vsel %vm586_vm7, %v1276_v13, %v583_v23 }
 0x498   :  { %v600_v31 = vmul.f32 %v598_v28, %v587_v26 }
 0x499   :  { %v591_v22 = vmul.f32 0.5, %v590_v21 }
 0x49b   :  { %v592_v24 = vsub.f32 1.5, %v591_v22 }
 0x49d   :  { %v593_v27 = vmul.f32 %v1278_v18, %v592_v24  ;;  %v1257_v24 = vld [vmem:[#allocation8 + $0x2] ss:$0 sm:$0xff] }
 0x49f   :  { %v597_v30 = vsel %vm596_vm9, %v1278_v18, %v593_v27 }
 0x4a0   :  { %v601_v32 = vmul.f32 %v599_v29, %v597_v30 }
 0x4a2   :  { %v602_v33 = vpack.c.bf16 %v601_v32, %v600_v31 }
 0x4a4   :  { %681 = vmatmul.bf16.vlgmr.msrb.gmra.mxu0 %v602_v33 }
 0x521   :  { %v682_v35 = vpop.f32.mrf.mxu0 }
 0x522   :  { %v683_v36 = vadd.f32 %v1256_v34, %v682_v35 }
 0x524   :  { %v687_v37 = vadd.f32 %v683_v36, %v1537_v57  ;;  %v1239_v36 = vld [vmem:[#allocation10 + $0xb8] sm:$0xff] }
 0x525   :  { %941 = vmatpush.bf16.msrb.mxu2 %v1239_v36 }
 0x526   :  { %v689_v38 = vmul.f32 0.1, %v687_v37 }
 0x528   :  { %v1568_v39 = vmax.f32 %v687_v37, %v689_v38  ;;  %v1238_v37 = vld [vmem:[#allocation10 + $0xb0] sm:$0xff]  ;;  %v1237_v38 = vld [vmem:[#allocation10 + $0xa8] sm:$0xff] }
 0x529   :  { %v684_v40 = vpop.f32.mrf.mxu0  ;;  %942 = vmatpush.bf16.msrb.mxu2 %v1238_v37 }
 0x52a   :  { %v685_v41 = vadd.f32 %v1256_v34, %v684_v40  ;;  %693 = vadd.xlane.f32.xlu1 %v1568_v39  ;;  %v699_v42 = vmul.f32 %v1568_v39, %v1568_v39  ;;  %v1236_v40 = vld [vmem:[#allocation10 + $0xa0] sm:$0xff] }
 0x52c   :  { %v688_v43 = vadd.f32 %v685_v41, %v1543_v63  ;;  %701 = vadd.xlane.f32.xlu0 %v699_v42  ;;  %v1226_v63 = vld [vmem:[#allocation7 + $0x90] sm:$0xff]  ;;  %v1235_v41 = vld [vmem:[#allocation10 + $0x98] sm:$0xff] }
 0x52d   :  { %813 = vmatpush.bf16.msrb.mxu1 %v1226_v63  ;;  %943 = vmatpush.bf16.msrb.mxu2 %v1237_v38  ;;  %v1234_v42 = vld [vmem:[#allocation10 + $0x90] sm:$0xff] }
 0x52e   :  { %v690_v44 = vmul.f32 0.1, %v688_v43 }
 0x530   :  { %v1574_v45 = vmax.f32 %v688_v43, %v690_v44  ;;  %v1233_v43 = vld [vmem:[#allocation10 + $0x88] sm:$0xff] }
 0x531   :  { %814 = vmatpush.bf16.msrb.mxu1 %v1225_v51  ;;  %944 = vmatpush.bf16.msrb.mxu2 %v1236_v40 }
 0x532   :  { %695 = vadd.xlane.f32.xlu2 %v1574_v45  ;;  %v700_v57 = vmul.f32 %v1574_v45, %v1574_v45 }
 0x534   :  { %703 = vadd.xlane.f32.xlu1 %v700_v57  ;;  %v1232_v57 = vld [vmem:[#allocation10 + $0x80] sm:$0xff] }
 0x535   :  { %815 = vmatpush.bf16.msrb.mxu1 %v1224_v53  ;;  %945 = vmatpush.bf16.msrb.mxu2 %v1235_v41 }
 0x539   :  { %946 = vmatpush.bf16.msrb.mxu2 %v1234_v42 }
 0x53d   :  { %947 = vmatpush.bf16.msrb.mxu2 %v1233_v43 }
 0x541   :  { %948 = vmatpush.bf16.msrb.mxu2 %v1232_v57 }
 0x59d   :  { %v694_v52 = vpop.xlane.xlu1 %693 }
 0x59e   :  { %v697_v54 = vmul.f32 %v694_v52, %v1515_v25 }
 0x59f   :  { %v702_v55 = vpop.xlane.xlu0 %701 }
 0x5a0   :  { %v707_v56 = vmul.f32 %v697_v54, %v697_v54  ;;  %v705_v58 = vmul.f32 %v702_v55, %v1515_v25  ;;  %v733_v18 = vsub.f32 %v1568_v39, %v697_v54 }
 0x5a2   :  { %v709_v59 = vsub.f32 %v705_v58, %v707_v56 }
 0x5a4   :  { %v711_v60 = vadd.f32 1e-05, %v709_v59 }
 0x5a5   :  { %v696_v61 = vpop.xlane.xlu2 %695 }
 0x5a6   :  { %1279 = vrsqrt.f32 %v711_v60  ;;  %v698_v62 = vmul.f32 %v696_v61, %v1515_v25  ;;  %vm719_vm11 = vweird.f32 %v711_v60 }
 0x5a7   :  { %v704_v8 = vpop.xlane.xlu1 %703 }
 0x5a8   :  { %v708_v0 = vmul.f32 %v698_v62, %v698_v62  ;;  %v706_v1 = vmul.f32 %v704_v8, %v1515_v25  ;;  %v734_v19 = vsub.f32 %v1574_v45, %v698_v62 }
 0x5aa   :  { %v710_v2 = vsub.f32 %v706_v1, %v708_v0 }
 0x5ac   :  { %v1280_v3 = vpop.eup %1279  ;;  %v712_v4 = vadd.f32 1e-05, %v710_v2 }
 0x5ad   :  { %v714_v11 = vmul.f32 %v1280_v3, %v711_v60  ;;  %vm720_vm10 = vweird.f32 %v1280_v3 }
 0x5ae   :  { %1281 = vrsqrt.f32 %v712_v4  ;;  %vm721_vm13 = vmor %vm719_vm11, %vm720_vm10  ;;  %vm729_vm14 = vweird.f32 %v712_v4 }
 0x5af   :  { %v715_v5 = vmul.f32 %v1280_v3, %v714_v11 }
 0x5b1   :  { %v716_v6 = vmul.f32 0.5, %v715_v5 }
 0x5b3   :  { %v717_v9 = vsub.f32 1.5, %v716_v6 }
 0x5b4   :  { %v1282_v7 = vpop.eup %1281 }
 0x5b5   :  { %v724_v10 = vmul.f32 %v1282_v7, %v712_v4  ;;  %v718_v14 = vmul.f32 %v1280_v3, %v717_v9  ;;  %vm730_vm12 = vweird.f32 %v1282_v7 }
 0x5b6   :  { %vm731_vm15 = vmor %vm729_vm14, %vm730_vm12 }
 0x5b7   :  { %v725_v12 = vmul.f32 %v1282_v7, %v724_v10  ;;  %v722_v16 = vsel %vm721_vm13, %v1280_v3, %v718_v14  ;;  %v1258_v14 = vld [vmem:[%s1615_s6 + $0x2] ss:$0 sm:$0xff] }
 0x5b8   :  { %v735_v21 = vmul.f32 %v733_v18, %v722_v16 }
 0x5b9   :  { %v726_v13 = vmul.f32 0.5, %v725_v12 }
 0x5bb   :  { %v727_v15 = vsub.f32 1.5, %v726_v13 }
 0x5bd   :  { %v728_v17 = vmul.f32 %v1282_v7, %v727_v15 }
 0x5bf   :  { %v732_v20 = vsel %vm731_vm15, %v1282_v7, %v728_v17 }
 0x5c0   :  { %v736_v22 = vmul.f32 %v734_v19, %v732_v20  ;;  %v1259_v19 = vld [vmem:[%s1616_s7] ss:$0 sm:$0xff] }
 0x5c2   :  { %v737_v23 = vpack.c.bf16 %v736_v22, %v735_v21 }
 0x5c4   :  { %816 = vmatmul.bf16.vlgmr.msrb.gmra.mxu1 %v737_v23 }
 0x641   :  { %v817_v26 = vpop.f32.mrf.mxu1 }
 0x642   :  { %v818_v27 = vadd.f32 %v1257_v24, %v817_v26 }
 0x644   :  { %v822_v28 = vmul.f32 0.1, %v818_v27 }
 0x646   :  { %v1585_v29 = vmax.f32 %v818_v27, %v822_v28 }
 0x648   :  { %826 = vadd.xlane.f32.xlu2 %v1585_v29  ;;  %v832_v30 = vmul.f32 %v1585_v29, %v1585_v29 }
 0x649   :  { %v819_v31 = vpop.f32.mrf.mxu1 }
 0x64a   :  { %v820_v32 = vadd.f32 %v1257_v24, %v819_v31  ;;  %834 = vadd.xlane.f32.xlu1 %v832_v30 }
 0x64c   :  { %v823_v33 = vmul.f32 0.1, %v820_v32 }
 0x64e   :  { %v825_v34 = vmax.f32 %v820_v32, %v823_v33 }
 0x650   :  { %828 = vadd.xlane.f32.xlu0 %v825_v34  ;;  %v833_v35 = vmul.f32 %v825_v34, %v825_v34 }
 0x652   :  { %836 = vadd.xlane.f32.xlu2 %v833_v35 }
 0x6bb   :  { %v827_v44 = vpop.xlane.xlu2 %826 }
 0x6bc   :  { %v830_v46 = vmul.f32 %v827_v44, %v1515_v25 }
 0x6bd   :  { %v835_v47 = vpop.xlane.xlu1 %834 }
 0x6be   :  { %v840_v48 = vmul.f32 %v830_v46, %v830_v46  ;;  %v838_v49 = vmul.f32 %v835_v47, %v1515_v25  ;;  %v866_v6 = vsub.f32 %v1585_v29, %v830_v46  ;;  %v1260_v29 = vld [vmem:[#allocation2] ss:$0 sm:$0xff] }
 0x6c0   :  { %v842_v50 = vsub.f32 %v838_v49, %v840_v48 }
 0x6c2   :  { %v844_v63 = vadd.f32 1e-05, %v842_v50 }
 0x6c3   :  { %v829_v51 = vpop.xlane.xlu0 %828 }
 0x6c4   :  { %1283 = vrsqrt.f32 %v844_v63  ;;  %v831_v52 = vmul.f32 %v829_v51, %v1515_v25  ;;  %vm852_vm1 = vweird.f32 %v844_v63 }
 0x6c5   :  { %v837_v53 = vpop.xlane.xlu2 %836 }
 0x6c6   :  { %v841_v54 = vmul.f32 %v831_v52, %v831_v52  ;;  %v839_v55 = vmul.f32 %v837_v53, %v1515_v25  ;;  %v867_v7 = vsub.f32 %v825_v34, %v831_v52 }
 0x6c8   :  { %v843_v56 = vsub.f32 %v839_v55, %v841_v54 }
 0x6ca   :  { %v1284_v58 = vpop.eup %1283  ;;  %v845_v59 = vadd.f32 1e-05, %v843_v56 }
 0x6cb   :  { %v847_v60 = vmul.f32 %v1284_v58, %v844_v63  ;;  %vm853_vm0 = vweird.f32 %v1284_v58 }
 0x6cc   :  { %1285 = vrsqrt.f32 %v845_v59  ;;  %vm854_vm3 = vmor %vm852_vm1, %vm853_vm0  ;;  %vm862_vm4 = vweird.f32 %v845_v59 }
 0x6cd   :  { %v848_v61 = vmul.f32 %v1284_v58, %v847_v60 }
 0x6cf   :  { %v849_v62 = vmul.f32 0.5, %v848_v61 }
 0x6d1   :  { %v850_v0 = vsub.f32 1.5, %v849_v62 }
 0x6d2   :  { %v1286_v8 = vpop.eup %1285 }
 0x6d3   :  { %v857_v1 = vmul.f32 %v1286_v8, %v845_v59  ;;  %v851_v4 = vmul.f32 %v1284_v58, %v850_v0  ;;  %vm863_vm2 = vweird.f32 %v1286_v8 }
 0x6d4   :  { %vm864_vm5 = vmor %vm862_vm4, %vm863_vm2 }
 0x6d5   :  { %v858_v2 = vmul.f32 %v1286_v8, %v857_v1  ;;  %v855_v25 = vsel %vm854_vm3, %v1284_v58, %v851_v4 }
 0x6d6   :  { %v868_v10 = vmul.f32 %v866_v6, %v855_v25 }
 0x6d7   :  { %v859_v3 = vmul.f32 0.5, %v858_v2 }
 0x6d9   :  { %v860_v11 = vsub.f32 1.5, %v859_v3 }
 0x6db   :  { %v861_v5 = vmul.f32 %v1286_v8, %v860_v11 }
 0x6dd   :  { %v865_v9 = vsel %vm864_vm5, %v1286_v8, %v861_v5 }
 0x6de   :  { %v869_v12 = vmul.f32 %v867_v7, %v865_v9 }
 0x6e0   :  { %v870_v13 = vpack.c.bf16 %v869_v12, %v868_v10 }
 0x6e2   :  { %949 = vmatmul.bf16.vlgmr.msrb.gmra.mxu2 %v870_v13 }
 0x765   :  { %v950_v15 = vpop.f32.mrf.mxu2 }
 0x766   :  { %v951_v16 = vadd.f32 %v1258_v14, %v950_v15 }
 0x768   :  { %v955_v17 = vadd.f32 %v951_v16, %v1568_v39 }
 0x76a   :  { %v957_v18 = vmul.f32 0.1, %v955_v17 }
 0x76c   :  { %v959_v20 = vmax.f32 %v955_v17, %v957_v18 }
 0x76d   :  { %v952_v21 = vpop.f32.mrf.mxu2 }
 0x76e   :  { %v953_v22 = vadd.f32 %v1258_v14, %v952_v21  ;;  %v965_v23 = vmul.f32 %v1259_v19, %v959_v20 }
 0x770   :  { %v956_v24 = vadd.f32 %v953_v22, %v1574_v45  ;;  %967 = vadd.xlane.f32.xlu0 %v965_v23 }
 0x772   :  { %v958_v26 = vmul.f32 0.1, %v956_v24 }
 0x774   :  { %v960_v27 = vmax.f32 %v956_v24, %v958_v26 }
 0x776   :  { %v966_v28 = vmul.f32 %v1259_v19, %v960_v27 }
 0x778   :  { %969 = vadd.xlane.f32.xlu1 %v966_v28 }
 0x7e3   :  { %v968_v30 = vpop.xlane.xlu0 %967 }
 0x7e4   :  { %v975_v39 = vadd.f32 %v1260_v29, %v968_v30 }
 0x7e6   :  { %978 = vst.msk [vmem:[%s1618_s9] sm:$0xff] %vm977_vm6, %v975_v39 }
 0x7eb   :  { %v970_v31 = vpop.xlane.xlu1 %969 }
 0x7ec   :  { %v976_v32 = vadd.f32 %v1260_v29, %v970_v31 }
 0x7ee   :  { %979 = vst.msk [vmem:[%s1618_s9 + $0x8] sm:$0xff] %vm977_vm6, %v976_v32 }
 0x7ef   :  { %984 = vsyncpa [#allocation4], 1 }
 0x7f0   :  { %985 = vsyncpa [#allocation6], 1 }
 0x7f1   :  { %986 = vsyncpa [#allocation9], 1 }

</bundles_post_ra>
